<compile_context>
chip_gen: v7x
topology: tpu7x:2x2x1
jax: 0.10.0
libtpu: 0.0.40
codegen_flags: <defaults>
</compile_context>

<pallas_src>
import jax
import jax.numpy as jnp
from jax import lax
from jax.experimental import pallas as pl
from jax.experimental.pallas import tpu as pltpu


_VMEM_LIMIT_BYTES = 48 << 20    # > v5e's 16 MiB scoped default; < v7x 64 MiB physical
_TILE_BUDGET_BYTES = 24 << 20   # budget for the double-buffered input tiles
_MAX_BLOCK_ROWS = 16384


def _round_up(x, m):
    return -(-x // m) * m


def _choose_block_rows(n_rows, row_bytes, *, multiple):
    """Rows per grid step from a VMEM budget; >= 4 steps for large batches."""
    if n_rows <= 256:
        # Single whole-array block; block dims equal to the array dims are
        # exempt from the (8, 128) tiling constraint.
        return n_rows
    cap = _TILE_BUDGET_BYTES // (2 * max(row_bytes, 1))       # x2: double-buffered
    cap = max(multiple, (cap // multiple) * multiple)
    cap = min(cap, _MAX_BLOCK_ROWS)
    # >= 4 grid steps so v7x's two TensorCores both get work on the "parallel"
    # axis and the pipeline has iterations to overlap; for very large batches
    # the cap (up to 16K rows) amortises the ~0.35 us per-step overhead.
    target = _round_up(pl.cdiv(n_rows, 4), multiple)
    return max(multiple, min(cap, target))


def _scorer_kernel(a_ref, w_ref, l_ref, o_ref):
    """score[r] = sum_ij a[r,i] W[i,j] l[r,j] for one batch tile.

    a_ref: (TB, Da)  audio tile (native dtype: bf16 or f32)
    w_ref: (Da, Dl)  bilinear weight (constant index_map -> stays resident)
    l_ref: (TB, Dl)  location tile (native dtype)
    o_ref: (TB, 1)   scores (f32)
    """
    proj = jnp.dot(a_ref[...], w_ref[...],
                   preferred_element_type=jnp.float32)            # MXU, f32 acc
    prod = proj * l_ref[...].astype(jnp.float32)                  # VPU
    # Row-sum as an MXU mat-vec against a ones column: keeps the reduction off
    # the XLU, which would otherwise become co-critical once inputs are bf16.
    ones_col = jnp.ones((prod.shape[-1], 1), dtype=jnp.float32)
    o_ref[...] = jnp.dot(prod, ones_col,
                         preferred_element_type=jnp.float32).astype(o_ref.dtype)


def _scorer_candidate_kernel(a_ref, wrep_ref, sel_ref, l_ref, o_ref):
    """Candidate scoring: each audio row scored against C candidate locations.

    a_ref:    (TG, Da)      un-broadcast audio rows
    wrep_ref: (Da, C*Dl)    weight tiled C times along the lane axis
    sel_ref:  (C*Dl, C)     0/1 segment-sum matrix (sel[k, c] = 1 iff k//Dl==c)
    l_ref:    (TG, C*Dl)    C location embeddings per audio row, lane-flattened
    o_ref:    (TG, C)       scores (f32)
    """
    proj = jnp.dot(a_ref[...], wrep_ref[...],
                   preferred_element_type=jnp.float32)            # (TG, C*Dl)
    prod = proj * l_ref[...].astype(jnp.float32)                  # VPU
    o_ref[...] = jnp.dot(prod, sel_ref[...],
                         preferred_element_type=jnp.float32).astype(o_ref.dtype)


def _flat_score(a2, l2, weight):
    """Scores for pre-flattened, shape-matched (b, Da) / (b, Dl) embeddings."""
    b, d_a = a2.shape
    d_l = l2.shape[-1]
    row_bytes = d_a * a2.dtype.itemsize + d_l * l2.dtype.itemsize + 4
    block_b = _choose_block_rows(b, row_bytes, multiple=128)
    grid = (pl.cdiv(b, block_b),)   # partial boundary block masked by Pallas

    flops = 2 * b * d_a * d_l + 3 * b * d_l
    bytes_accessed = (a2.size * a2.dtype.itemsize
                      + l2.size * l2.dtype.itemsize
                      + weight.size * weight.dtype.itemsize
                      + b * 4)

    return pl.pallas_call(
        _scorer_kernel,
        out_shape=jax.ShapeDtypeStruct((b, 1), jnp.float32),
        grid_spec=pltpu.PrefetchScalarGridSpec(
            num_scalar_prefetch=0,
            grid=grid,
            in_specs=[
                pl.BlockSpec((block_b, d_a), lambda i: (i, 0)),
                pl.BlockSpec((d_a, d_l), lambda i: (0, 0)),
                pl.BlockSpec((block_b, d_l), lambda i: (i, 0)),
            ],
            out_specs=pl.BlockSpec((block_b, 1), lambda i: (i, 0)),
        ),
        compiler_params=pltpu.CompilerParams(
            dimension_semantics=("parallel",),
            vmem_limit_bytes=_VMEM_LIMIT_BYTES),
        cost_estimate=pl.CostEstimate(flops=flops, transcendentals=0,
                                      bytes_accessed=bytes_accessed),
    )(a2, weight, l2)


def _candidate_score(audio, loc, weight, bshape):
    """Audio (..., 1, Da) scored against loc (..., C, Dl) without broadcasting
    the audio array in HBM."""
    d_a = audio.shape[-1]
    d_l = loc.shape[-1]
    n_cand = int(bshape[-1])
    g = 1
    for s in bshape[:-1]:
        g *= int(s)

    a2 = audio.reshape(g, d_a)                   # un-broadcast audio rows
    l2 = loc.reshape(g, n_cand * d_l)            # (g, C*Dl), lane-flattened
    w_rep = jnp.tile(weight, (1, n_cand))        # (Da, C*Dl), tiny, resident
    sel = (jnp.arange(n_cand * d_l)[:, None] // d_l
           == jnp.arange(n_cand)[None, :]).astype(jnp.float32)   # (C*Dl, C)

    row_bytes = (d_a * a2.dtype.itemsize
                 + n_cand * d_l * l2.dtype.itemsize   # loc tile
                 + n_cand * d_l * 4                   # f32 proj/prod intermediates
                 + n_cand * 4)                        # output row
    block_g = _choose_block_rows(g, row_bytes, multiple=8)
    grid = (pl.cdiv(g, block_g),)

    flops = (2 * g * d_a * n_cand * d_l + g * n_cand * d_l
             + 2 * g * n_cand * d_l * n_cand)
    bytes_accessed = (a2.size * a2.dtype.itemsize
                      + l2.size * l2.dtype.itemsize
                      + w_rep.size * w_rep.dtype.itemsize
                      + sel.size * 4
                      + g * n_cand * 4)

    out = pl.pallas_call(
        _scorer_candidate_kernel,
        out_shape=jax.ShapeDtypeStruct((g, n_cand), jnp.float32),
        grid_spec=pltpu.PrefetchScalarGridSpec(
            num_scalar_prefetch=0,
            grid=grid,
            in_specs=[
                pl.BlockSpec((block_g, d_a), lambda i: (i, 0)),
                pl.BlockSpec((d_a, n_cand * d_l), lambda i: (0, 0)),
                pl.BlockSpec((n_cand * d_l, n_cand), lambda i: (0, 0)),
                pl.BlockSpec((block_g, n_cand * d_l), lambda i: (i, 0)),
            ],
            out_specs=pl.BlockSpec((block_g, n_cand), lambda i: (i, 0)),
        ),
        compiler_params=pltpu.CompilerParams(
            dimension_semantics=("parallel",),
            vmem_limit_bytes=_VMEM_LIMIT_BYTES),
        cost_estimate=pl.CostEstimate(flops=flops, transcendentals=0,
                                      bytes_accessed=bytes_accessed),
    )(a2, w_rep, sel, l2)
    return out.reshape(bshape)


def bilinear_score(audio_embedding: jax.Array,
                   location_embedding: jax.Array,
                   weight: jax.Array) -> jax.Array:
    """Affinity scores between audio and location embeddings.

    audio_embedding:    (*batch_a, d_audio_embed)
    location_embedding: (*batch_l, d_location_embed)  (batch shapes broadcast)
    weight:             (d_audio_embed, d_location_embed)
    returns:            (*broadcast(batch_a, batch_l),) float32 scores
    """
    d_a = audio_embedding.shape[-1]
    d_l = location_embedding.shape[-1]
    batch_a = tuple(audio_embedding.shape[:-1])
    batch_l = tuple(location_embedding.shape[:-1])
    bshape = tuple(jnp.broadcast_shapes(batch_a, batch_l))

    # Keep low-precision embeddings native end-to-end (HBM-bound kernel); match
    # the tiny resident weight so the main matmul runs bf16 x bf16, f32 accum.
    if audio_embedding.dtype == jnp.bfloat16 and weight.dtype != jnp.bfloat16:
        weight = weight.astype(jnp.bfloat16)

    # Candidate-scoring fast path: audio broadcast over the trailing batch dim
    # only.  Avoids materialising a C-times larger audio array in HBM; the
    # replication happens on the MXU inside the kernel instead.
    if (len(bshape) >= 1 and len(batch_a) == len(bshape)
            and batch_l == bshape and bshape[-1] > 1
            and batch_a[-1] == 1 and batch_a[:-1] == bshape[:-1]):
        n_cand = int(bshape[-1])
        row_bytes = (d_a * audio_embedding.dtype.itemsize
                     + n_cand * d_l * (location_embedding.dtype.itemsize + 4)
                     + n_cand * 4)
        if 2 * 8 * row_bytes <= _TILE_BUDGET_BYTES:   # fits the tiling scheme
            return _candidate_score(audio_embedding, location_embedding,
                                    weight, bshape)

    # General path: materialise the broadcast only when shapes actually differ.
    # TODO(synk): location-broadcast / multi-axis broadcast patterns still pay
    # for an HBM-materialised broadcast; fold those into index_maps too.
    if batch_a != bshape:
        audio_embedding = jnp.broadcast_to(audio_embedding, bshape + (d_a,))
    if batch_l != bshape:
        location_embedding = jnp.broadcast_to(location_embedding,
                                              bshape + (d_l,))
    out = _flat_score(audio_embedding.reshape(-1, d_a),
                      location_embedding.reshape(-1, d_l), weight)
    return out.reshape(bshape)


class ScorerPallas:
    """Bilinear affinity scorer with deterministically initialized weight."""

    def __init__(self, d_audio_embed: int, d_location_embed: int, key):
        self.d_audio_embed = d_audio_embed
        self.d_location_embed = d_location_embed
        scale = 1.0 / jnp.sqrt(jnp.float32(d_audio_embed))
        self.weight = scale * jax.random.normal(
            key, (d_audio_embed, d_location_embed), dtype=jnp.float32)

    def __call__(self, audio_embedding, location_embedding):
        return bilinear_score(audio_embedding, location_embedding, self.weight)


if __name__ == "__main__":
    key = jax.random.PRNGKey(0)
    k_w, k_a1, k_l1, k_a2, k_l2, k_a3, k_l3, k_a4, k_l4 = jax.random.split(key, 9)

    d_audio_embed = 32
    d_location_embed = 64
    scorer = ScorerPallas(d_audio_embed, d_location_embed, k_w)

    def ref_scores(a, l, w):
        return jnp.einsum("...i,ij,...j->...",
                          a.astype(jnp.float32), w.astype(jnp.float32),
                          l.astype(jnp.float32),
                          precision=lax.Precision.HIGHEST)

    # Tolerances: the kernel intentionally uses DEFAULT matmul precision
    # (single-pass bf16 MXU), so f32 inputs see ~0.4% per-product rounding.
    # Scores are O(8) here, so the expected absolute error is <~0.15.
    ATOL, RTOL = 0.5, 5e-2

    # 1) Small equal-shape batch (single whole-array block path).
    batch = (2, 8)
    audio = jax.random.normal(k_a1, batch + (d_audio_embed,), dtype=jnp.float32)
    loc = jax.random.normal(k_l1, batch + (d_location_embed,), dtype=jnp.float32)
    s1 = scorer(audio, loc)
    jax.block_until_ready(s1)
    assert s1.shape == batch, s1.shape
    assert jnp.allclose(s1, ref_scores(audio, loc, scorer.weight),
                        atol=ATOL, rtol=RTOL)

    # 2) Larger flat batch, not a multiple of the tile
    #    (multi-step grid + masked partial boundary block path).
    batch2 = (6, 400)  # 2400 rows -> block_b=640, grid of 4 with partial tail
    audio2 = jax.random.normal(k_a2, batch2 + (d_audio_embed,), dtype=jnp.float32)
    loc2 = jax.random.normal(k_l2, batch2 + (d_location_embed,), dtype=jnp.float32)
    s2 = scorer(audio2, loc2)
    jax.block_until_ready(s2)
    assert s2.shape == batch2, s2.shape
    assert jnp.allclose(s2, ref_scores(audio2, loc2, scorer.weight),
                        atol=ATOL, rtol=RTOL)

    # 3) Broadcast case: each audio clip scored against 8 candidate locations
    #    (dedicated kernel, audio never materialised 8x in HBM).
    audio3 = jax.random.normal(k_a3, (4, 1, d_audio_embed), dtype=jnp.float32)
    loc3 = jax.random.normal(k_l3, (4, 8, d_location_embed), dtype=jnp.float32)
    s3 = scorer(audio3, loc3)
    jax.block_until_ready(s3)
    assert s3.shape == (4, 8), s3.shape
    assert jnp.allclose(s3, ref_scores(audio3, loc3, scorer.weight),
                        atol=ATOL, rtol=RTOL)

    # 4) bf16 embeddings stay bf16 through the kernel (native-dtype path,
    #    multi-step grid with a partial tail).
    batch4 = (3, 170)  # 510 rows -> block_b=128, grid of 4
    audio4 = jax.random.normal(k_a4, batch4 + (d_audio_embed,),
                               dtype=jnp.bfloat16)
    loc4 = jax.random.normal(k_l4, batch4 + (d_location_embed,),
                             dtype=jnp.bfloat16)
    s4 = scorer(audio4, loc4)
    jax.block_until_ready(s4)
    assert s4.shape == batch4, s4.shape
    w_bf16 = scorer.weight.astype(jnp.bfloat16)
    assert jnp.allclose(s4, ref_scores(audio4, loc4, w_bf16),
                        atol=ATOL, rtol=RTOL)

    print("KERNEL_OK")
</pallas_src>

<mosaic_0001>
module attributes {stable_mosaic.version = 11 : i64} {
  func.func @_scorer_kernel(%arg0: i32, %arg1: memref<16x32xf32, #tpu.memory_space<vmem>>, %arg2: memref<32x64xf32, #tpu.memory_space<vmem>>, %arg3: memref<16x64xf32, #tpu.memory_space<vmem>>, %arg4: memref<16x1xf32, #tpu.memory_space<vmem>>) attributes {dimension_semantics = [#tpu.dimension_semantics<parallel>], iteration_bounds = array<i64: 1>, scalar_prefetch = 0 : i64, scratch_operands = 0 : i64, tpu.core_type = #tpu.core_type<tc>, window_params = [{transform_indices = @transform_0, window_bounds = array<i64: 16, 32>}, {pipeline_mode = #tpu.pipeline_mode<synchronous>, transform_indices = @transform_1, window_bounds = array<i64: 32, 64>}, {transform_indices = @transform_2, window_bounds = array<i64: 16, 64>}, {transform_indices = @transform_3, window_bounds = array<i64: 16, 1>}]} {
    %c0 = arith.constant 0 : index
    %c0_0 = arith.constant 0 : index
    %0 = vector.load %arg1[%c0, %c0_0] : memref<16x32xf32, #tpu.memory_space<vmem>>, vector<16x32xf32>
    %c0_1 = arith.constant 0 : index
    %c0_2 = arith.constant 0 : index
    %1 = vector.load %arg2[%c0_1, %c0_2] : memref<32x64xf32, #tpu.memory_space<vmem>>, vector<32x64xf32>
    %cst = arith.constant dense<0.000000e+00> : vector<16x64xf32>
    %2 = tpu.matmul %0, %1, %cst {dimension_numbers = #tpu.dot_dimension_numbers<[1], [0], [0], [1], [0, 0, 1, 1], [], []>} : vector<16x32xf32>, vector<32x64xf32>, vector<16x64xf32> -> vector<16x64xf32>
    %c0_3 = arith.constant 0 : index
    %c0_4 = arith.constant 0 : index
    %3 = vector.load %arg3[%c0_3, %c0_4] : memref<16x64xf32, #tpu.memory_space<vmem>>, vector<16x64xf32>
    %4 = arith.mulf %2, %3 : vector<16x64xf32>
    %cst_5 = arith.constant 1.000000e+00 : f32
    %5 = vector.broadcast %cst_5 : f32 to vector<64x1xf32>
    %cst_6 = arith.constant dense<0.000000e+00> : vector<16x1xf32>
    %6 = tpu.matmul %4, %5, %cst_6 {dimension_numbers = #tpu.dot_dimension_numbers<[1], [0], [0], [1], [0, 0, 1, 1], [], []>} : vector<16x64xf32>, vector<64x1xf32>, vector<16x1xf32> -> vector<16x1xf32>
    %c0_7 = arith.constant 0 : index
    %c0_8 = arith.constant 0 : index
    %7 = vector.load %arg4[%c0_7, %c0_8] : memref<16x1xf32, #tpu.memory_space<vmem>>, vector<16x1xf32>
    tpu.vector_store %arg4[%c0_7, %c0_8], %6 {strides = array<i32>} : memref<16x1xf32, #tpu.memory_space<vmem>>, vector<16x1xf32>,
    return
  }
  func.func @transform_0(%arg0: i32) -> (i32, i32) {
    %c0_i32 = arith.constant 0 : i32
    %c0_i32_0 = arith.constant 0 : i32
    return %arg0, %c0_i32 : i32, i32
  }
  func.func @transform_1(%arg0: i32) -> (i32, i32) {
    %c0_i32 = arith.constant 0 : i32
    %c0_i32_0 = arith.constant 0 : i32
    %c0_i32_1 = arith.constant 0 : i32
    return %c0_i32, %c0_i32_0 : i32, i32
  }
  func.func @transform_2(%arg0: i32) -> (i32, i32) {
    %c0_i32 = arith.constant 0 : i32
    %c0_i32_0 = arith.constant 0 : i32
    return %arg0, %c0_i32 : i32, i32
  }
  func.func @transform_3(%arg0: i32) -> (i32, i32) {
    %c0_i32 = arith.constant 0 : i32
    %c0_i32_0 = arith.constant 0 : i32
    return %arg0, %c0_i32 : i32, i32
  }
}

</mosaic_0001>

<bundles_post_ra>
// kernel: tpu_custom_call.1
= control target key start
LH: loop header
LB: loop body
LE: loop exit
PB: predicated region body
PF: predicated region fallthrough
CT: control target
= control target key end

     0   :  { %8 = vsyncpa [#allocation3], 0  ;;  %s466_s0 = inlined_call_operand.hbm [shape: f32[16,32], index: 0, kind: input, shape index: {}]   ;;  %s467_s1 = inlined_call_operand.hbm [shape: f32[32,64], index: 1, kind: input, shape index: {}]   ;;  %s468_s2 = inlined_call_operand.hbm [shape: f32[16,64], index: 2, kind: input, shape index: {}]   ;;  %s469_s3 = inlined_call_operand.vmem [shape: f32[16,1], index: 3, kind: output, shape index: {}]  }
   0x1   :  { %9 = vsyncpa [#allocation5], 0  ;;  %s380_s12 = smov [#allocation4]   ;;  %s381_s14 = smov [#allocation2]  }
   0x2   :  { %s27_s13 = sshll.u32 %s380_s12, 4  ;;  %s15_s15 = sshll.u32 %s381_s14, 4  ;;  %s28_s13 = int_to_ptr.vmem [resolvable:$true] %s27_s13  ;;  %s406_s15 = int_to_ptr.vmem [resolvable:$true] %s15_s15 }
   0x3   :  { %s310_s18 = scalar_lea.hbm %s467_s1, 512 }
   0x4   :  { %p311_p0 = scmp.ne.s32.totalorder %s467_s1, %s310_s18  ;;  %p314_p1 = scmp.lt.u32.totalorder %s310_s18, %s467_s1 }
   0x6   :  { %p316_p2 = pnand %p314_p1, %p311_p0 }
   0x8   :  { %319 = shalt.err (!%p316_p2)
}
   0x9   :  { %s320_s23 = scalar_lea.vmem %s28_s13, 512  ;;  %p325_p4 = scmp.lt.s32.totalorder %s28_s13, %s28_s13 }
   0xa   :  { %p321_p3 = scmp.ne.s32.totalorder %s28_s13, %s320_s23  ;;  %p326_p5 = scmp.lt.s32.totalorder %s320_s23, %s320_s23 }
   0xc   :  { %p327_p6 = por %p326_p5, %p325_p4 }
   0xe   :  { %p328_p7 = pnand %p327_p6, %p321_p3 }
  0x10   :  { %331 = shalt.err (!%p328_p7)
}
  0x11   :  { %s382_s24 = smov 128   ;;  %s383_s25 = smov 8  }
  0x12   :  { %33 = dma.hbm_to_vmem [thread:$0]  %s467_s1, 512, %s28_s13, [#allocation5], %s382_s24, %s382_s24, %s383_s25  }
  0x13   :  { %s332_s30 = scalar_lea.hbm %s466_s0, 256 }
  0x14   :  { %p333_p8 = scmp.ne.s32.totalorder %s466_s0, %s332_s30  ;;  %p336_p9 = scmp.lt.u32.totalorder %s332_s30, %s466_s0 }
  0x16   :  { %p338_p10 = pnand %p336_p9, %p333_p8 }
  0x18   :  { %341 = shalt.err (!%p338_p10)
}
  0x19   :  { %s342_s8 = scalar_lea.vmem %s406_s15, 256  ;;  %p347_p12 = scmp.lt.s32.totalorder %s406_s15, %s406_s15 }
  0x1a   :  { %p343_p11 = scmp.ne.s32.totalorder %s406_s15, %s342_s8  ;;  %p348_p13 = scmp.lt.s32.totalorder %s342_s8, %s342_s8 }
  0x1c   :  { %p349_p0 = por %p348_p13, %p347_p12 }
  0x1e   :  { %p350_p1 = pnand %p349_p0, %p343_p11 }
  0x20   :  { %353 = shalt.err (!%p350_p1)
}
  0x21   :  { %21 = dma.hbm_to_vmem [thread:$0]  %s466_s0, 256, %s406_s15, [#allocation3], %s382_s24, %s382_s24, %s383_s25  }
  0x22   :  { %s384_s10 = smov [#allocation6]   ;;  %s354_s14 = scalar_lea.hbm %s468_s2, 256 }
  0x23   :  { %s39_s11 = sshll.u32 %s384_s10, 4  ;;  %p355_p2 = scmp.ne.s32.totalorder %s468_s2, %s354_s14  ;;  %s40_s11 = int_to_ptr.vmem [resolvable:$true] %s39_s11 }
  0x24   :  { %p358_p3 = scmp.lt.u32.totalorder %s354_s14, %s468_s2 }
  0x26   :  { %p360_p4 = pnand %p358_p3, %p355_p2 }
  0x28   :  { %363 = shalt.err (!%p360_p4)
}
  0x29   :  { %s364_s20 = scalar_lea.vmem %s40_s11, 256  ;;  %p369_p6 = scmp.lt.s32.totalorder %s40_s11, %s40_s11 }
  0x2a   :  { %p365_p5 = scmp.ne.s32.totalorder %s40_s11, %s364_s20  ;;  %p370_p7 = scmp.lt.s32.totalorder %s364_s20, %s364_s20 }
  0x2c   :  { %p371_p8 = por %p370_p7, %p369_p6 }
  0x2e   :  { %p372_p9 = pnand %p371_p8, %p365_p5 }
  0x30   :  { %375 = shalt.err (!%p372_p9)
}
  0x31   :  { %45 = dma.hbm_to_vmem [thread:$0]  %s468_s2, 256, %s40_s11, [#allocation5], %s382_s24, %s382_s24, %s383_s25  }
  0x32   :  { %376 = dma.done.wait [#allocation3], 256  }
  0x33   :  { %377 = vsyncadd [#allocation3], 4294967040 }
  0x34   :  { %378 = dma.done.wait [#allocation5], 768  }
  0x35   :  { %379 = vsyncadd [#allocation5], 4294966528  ;;  %v385_v0 = vmov 1.0|1.0   ;;  %vm61_vm0 = vcmask 261120   ;;  %v57_v1 = vld [vmem:[#allocation4] sm:$0xff] }
  0x36   :  { %296 = vmatprep.subr.bf16.mxu1 %v385_v0  ;;  %v58_v2 = vld [vmem:[#allocation4 + $0x8] sm:$0xff]  ;;  %v59_v3 = vld [vmem:[#allocation4 + $0x10] sm:$0xff]  ;;  %v60_v5 = vld [vmem:[#allocation4 + $0x18] sm:$0xff]  ;;  %vm147_vm1 = vcmask 523264   ;;  %vm229_vm2 = vcmask 7168  }
  0x37   :  { %297 = vmatpush3.bf16.msra.mxu1 %v385_v0  ;;  %v288_v4 = vpack.c.bf16 %v58_v2, %v57_v1  ;;  %v55_v6 = vld [vmem:[#allocation2] sm:$0xff]  ;;  %v292_v7 = vpack.c.bf16 %v60_v5, %v59_v3  ;;  %v56_v8 = vld [vmem:[#allocation2 + $0x8] sm:$0xff]  ;;  %v143_v9 = vld [vmem:[#allocation6] sm:$0xff] }
  0x38   :  { %298 = vmatprep.subr.bf16.mxu1 %v385_v0  ;;  %266 = vmatprep.mubr.msk.f32.mxu0 %vm61_vm0, %v55_v6  ;;  %v144_v11 = vld [vmem:[#allocation6 + $0x8] sm:$0xff] }
  0x39   :  { %289 = vmatprep.subr.bf16.mxu0 %v288_v4 }
  0x3a   :  { %291 = vmatpush3.bf16.msra.mxu0 %v288_v4 }
  0x3b   :  { %299 = vmatpush3.bf16.msra.mxu1 %v385_v0  ;;  %293 = vmatprep.subr.bf16.mxu0 %v292_v7 }
  0x3c   :  { %300 = vmatprep.subr.bf16.mxu1 %v385_v0 }
  0x3e   :  { %295 = vmatpush3.bf16.msra.mxu0 %v292_v7 }
  0x3f   :  { %301 = vmatpush3.bf16.msra.mxu1 %v385_v0 }
  0x40   :  { %302 = vmatprep.subr.bf16.mxu1 %v385_v0 }
  0x41   :  { %267 = vmatmul.mubr.msk.f32.vlgmr.msra.gmra.mrb[0].mxu0 %vm61_vm0, %v56_v8 }
  0x43   :  { %303 = vmatpush3.bf16.msra.mxu1 %v385_v0 }
 0x114   :  { %v268_v10 = vpop.f32.mrb[0].mxu0 }
 0x115   :  { %v134_v12 = vpop.f32.mrb[1].mxu0  ;;  %v146_v14 = vmul.f32 %v268_v10, %v144_v11 }
 0x116   :  { %v145_v13 = vmul.f32 %v143_v9, %v134_v12 }
 0x118   :  { %285 = vmatprep.mubr.msk.f32.mxu1 %vm147_vm1, %v145_v13 }
 0x119   :  { %286 = vmatmul.mubr.msk.f32.vlgmr.msra.gmra.mrb[0].mxu1 %vm147_vm1, %v146_v14 }
 0x1ec   :  { %v287_v15 = vpop.f32.mrb[0].mxu1 }
 0x1ed   :  { %231 = vst.msk [vmem:[%s469_s3 + $0x8] sm:$0xff] %vm229_vm2, %v287_v15  ;;  %v220_v16 = vpop.f32.mrb[1].mxu1 }
 0x1ee   :  { %230 = vst.msk [vmem:[%s469_s3] sm:$0xff] %vm229_vm2, %v220_v16 }
 0x1ef   :  { %236 = vsyncpa [#allocation3], 1 }
 0x1f0   :  { %237 = vsyncpa [#allocation5], 1 }

</bundles_post_ra>
